<compile_context>
chip_gen: v7x
topology: tpu7x:2x2x1
jax: 0.10.0
libtpu: 0.0.40
codegen_flags: <defaults>
</compile_context>

<pallas_src>
import jax
import jax.numpy as jnp
from jax import lax
from jax.experimental import pallas as pl
from jax.experimental.pallas import tpu as pltpu

EPS = 1e-5
LANES = 128
SUBLANES = 8
_VMEM_STEP_BUDGET = 12 * 1024 * 1024   # per-step working set, safe for v7x (64 MiB/TC)
_TM_CAP = 64 * 1024                    # review: ~16K-64K for small channel counts


def _round_up(x, m):
    return pl.cdiv(x, m) * m


def _choose_tm(Mb, K2_pad, C_out_pad):
    """Lane-dense, VMEM-aware position tile (per image)."""
    # Per output column: double-buffered bf16 input block + f32 relu temp
    # + double-buffered f32 output block (+ slack for the dot result).
    bytes_per_col = K2_pad * (2 * 2 + 4) + C_out_pad * (2 * 4 + 4)
    cap = max(LANES, min(_VMEM_STEP_BUDGET // bytes_per_col, _TM_CAP))
    cap = (cap // LANES) * LANES
    if Mb <= cap:
        # One full-width tile per image: no M padding, no output slice pass,
        # block last dim == full array dim (allowed even if not 128-aligned).
        return Mb, Mb
    return cap, _round_up(Mb, cap)


def _make_kernel(C_in_pad, C_half, C_out, C_out_pad, split):
    def kernel(xs_ref, w_ref, b_ref, o_ref):
        # Upcast after load (v5e has no bf16 VALU); ReLU on zero padding is a no-op.
        xs = jnp.maximum(xs_ref[...].astype(jnp.float32), 0.0)     # (K2_pad, TM)
        tm = xs.shape[-1]
        if split:
            # Exploit block-diagonal folded weight: two half-size contractions
            # writing sublane-aligned output row blocks.
            y1 = jnp.dot(w_ref[0:C_half, 0:C_in_pad], xs[0:C_in_pad, :],
                         preferred_element_type=jnp.float32)
            y2 = jnp.dot(w_ref[C_half:C_out, C_in_pad:], xs[C_in_pad:, :],
                         preferred_element_type=jnp.float32)
            o_ref[0:C_half, :] = y1 + b_ref[0:C_half, :]
            o_ref[C_half:C_out, :] = y2 + b_ref[C_half:C_out, :]
            if C_out_pad > C_out:
                o_ref[C_out:, :] = jnp.zeros((C_out_pad - C_out, tm), jnp.float32)
        else:
            # C_half not sublane-aligned: single MXU dot against the block-diagonal
            # weight (half zeros). HBM-bound kernel -> the extra MXU work is free.
            y = jnp.dot(w_ref[...], xs, preferred_element_type=jnp.float32)
            o_ref[...] = y + b_ref[...]
    return kernel


def factorized_reduce_pallas(x_nchw, kp):
    """x_nchw: (B, C_in, H, W) float32; kp: folded params from init_params."""
    B, C_in, H, W = x_nchw.shape
    assert H % 2 == 0 and W % 2 == 0, "even spatial dims required (as in DARTS)"
    C_out = kp["bias"].shape[0]
    C_half = C_out // 2
    Ho, Wo = H // 2, W // 2
    Mb = Ho * Wo

    C_in_pad = _round_up(C_in, SUBLANES)
    K2_pad = 2 * C_in_pad                    # multiple of 16 (bf16 sublane tile)
    C_out_pad = _round_up(C_out, SUBLANES)
    TM, Mb_pad = _choose_tm(Mb, K2_pad, C_out_pad)

    # ---- Layout pass (single fused XLA pass under jit): stride-2 deinterleave of
    # even-even / odd-odd samples into a per-batch (K2_pad, Mb_pad) bf16 slab.
    # Batch stays the leading axis (no transpose); it becomes a parallel grid axis.
    xf = x_nchw.astype(jnp.float32)
    xe = xf[:, :, 0::2, 0::2].reshape(B, C_in, Mb)       # input of conv_1
    xo = xf[:, :, 1::2, 1::2].reshape(B, C_in, Mb)       # input of conv_2
    pad = ((0, 0), (0, C_in_pad - C_in), (0, Mb_pad - Mb))
    xs = jnp.concatenate([jnp.pad(xe, pad), jnp.pad(xo, pad)], axis=1)
    xs = xs.astype(jnp.bfloat16)                         # halve the dominant HBM stream

    # Folded (BN-scaled) block-diagonal weight + bias, padded to the kernel layout.
    Wm = jnp.zeros((C_out_pad, K2_pad), jnp.float32)
    Wm = Wm.at[:C_half, :C_in].set(kp["w1"])
    Wm = Wm.at[C_half:C_out, C_in_pad:C_in_pad + C_in].set(kp["w2"])
    bias = jnp.pad(kp["bias"], (0, C_out_pad - C_out)).reshape(C_out_pad, 1)

    split = (C_half % SUBLANES == 0)
    kernel = _make_kernel(C_in_pad, C_half, C_out, C_out_pad, split)

    out = pl.pallas_call(
        kernel,
        out_shape=jax.ShapeDtypeStruct((B, C_out_pad, Mb_pad), jnp.float32),
        grid_spec=pltpu.PrefetchScalarGridSpec(
            num_scalar_prefetch=0,
            grid=(B, Mb_pad // TM),                       # >= 2 parallel steps for v7x
            in_specs=[
                pl.BlockSpec((None, K2_pad, TM), lambda b, m: (b, 0, m)),   # activations
                pl.BlockSpec((C_out_pad, K2_pad), lambda b, m: (0, 0)),     # folded weight
                pl.BlockSpec((C_out_pad, 1), lambda b, m: (0, 0)),          # folded bias
            ],
            out_specs=pl.BlockSpec((None, C_out_pad, TM), lambda b, m: (b, 0, m)),
        ),
        compiler_params=pltpu.CompilerParams(
            dimension_semantics=("parallel", "parallel"),
            vmem_limit_bytes=48 * 1024 * 1024,
        ),
    )(xs, Wm, bias)

    # Padded rows/cols are a no-op slice when C_out/Mb are already aligned.
    return out[:, :C_out, :Mb].reshape(B, C_out, Ho, Wo)


def init_params(key, C_in, C_out):
    assert C_out % 2 == 0
    C_half = C_out // 2
    ks = jax.random.split(key, 6)
    # PyTorch-shaped conv weights (OIHW, 1x1, no bias) + BN params / running stats.
    w1 = 0.1 * jax.random.normal(ks[0], (C_half, C_in, 1, 1), jnp.float32)
    w2 = 0.1 * jax.random.normal(ks[1], (C_half, C_in, 1, 1), jnp.float32)
    gamma = 1.0 + 0.1 * jax.random.normal(ks[2], (C_out,), jnp.float32)
    beta = 0.1 * jax.random.normal(ks[3], (C_out,), jnp.float32)
    rm = 0.1 * jax.random.normal(ks[4], (C_out,), jnp.float32)
    rv = 1.0 + 0.1 * jnp.abs(jax.random.normal(ks[5], (C_out,), jnp.float32))
    torch_w = dict(w1=w1, w2=w2, gamma=gamma, beta=beta, rm=rm, rv=rv)

    # Fold inference-mode BN into per-output-channel scale/bias; scale into weights.
    scale = gamma / jnp.sqrt(rv + EPS)
    bias = beta - rm * scale
    kp = dict(
        w1=w1[:, :, 0, 0] * scale[:C_half, None],     # rows [0:C_half]   (even-even samples)
        w2=w2[:, :, 0, 0] * scale[C_half:, None],     # rows [C_half:C_out] (odd-odd samples)
        bias=bias,
    )
    return torch_w, kp


def ref_factorized_reduce(x, w):
    dn = ("NCHW", "OIHW", "NCHW")
    scale = w["gamma"] / jnp.sqrt(w["rv"] + EPS)
    bias = w["beta"] - w["rm"] * scale
    y = jnp.maximum(x, 0.0)
    o1 = lax.conv_general_dilated(y, w["w1"], (2, 2), [(0, 0), (0, 0)],
                                  dimension_numbers=dn)
    o2 = lax.conv_general_dilated(y[:, :, 1:, 1:], w["w2"], (2, 2),
                                  [(0, 0), (0, 0)], dimension_numbers=dn)
    out = jnp.concatenate([o1, o2], axis=1)
    return out * scale[None, :, None, None] + bias[None, :, None, None]


if __name__ == "__main__":
    fwd = jax.jit(factorized_reduce_pallas)
    key = jax.random.PRNGKey(0)
    # Config 1 exercises the combined block-diagonal dot (C_half=4, not sublane aligned);
    # config 2 exercises the split two-contraction path (C_half=8).
    for (B, C_in, C_out, H, W) in [(2, 4, 8, 16, 16), (2, 16, 16, 16, 16)]:
        key, kx, kw = jax.random.split(key, 3)
        x = jax.random.normal(kx, (B, C_in, H, W), jnp.float32)
        torch_w, kp = init_params(kw, C_in, C_out)

        out = jax.block_until_ready(fwd(x, kp))
        ref = ref_factorized_reduce(x, torch_w)

        assert out.shape == ref.shape, (out.shape, ref.shape)
        max_err = float(jnp.max(jnp.abs(out - ref)))
        # Activations travel as bf16 (f32 accumulation) -> loosened tolerance.
        assert jnp.allclose(out, ref, atol=3e-2, rtol=3e-2), max_err

    print("KERNEL_OK")
</pallas_src>

<mosaic_0001>
module attributes {stable_mosaic.version = 11 : i64} {
  func.func @kernel(%arg0: i32, %arg1: i32, %arg2: memref<1x16x64xbf16, #tpu.memory_space<vmem>>, %arg3: memref<8x16xf32, #tpu.memory_space<vmem>>, %arg4: memref<8x1xf32, #tpu.memory_space<vmem>>, %arg5: memref<1x8x64xf32, #tpu.memory_space<vmem>>) attributes {dimension_semantics = [#tpu.dimension_semantics<parallel>, #tpu.dimension_semantics<parallel>], iteration_bounds = array<i64: 2, 1>, scalar_prefetch = 0 : i64, scratch_operands = 0 : i64, tpu.core_type = #tpu.core_type<tc>, window_params = [{transform_indices = @transform_0, window_bounds = array<i64: 1, 16, 64>}, {pipeline_mode = #tpu.pipeline_mode<synchronous>, transform_indices = @transform_1, window_bounds = array<i64: 8, 16>}, {pipeline_mode = #tpu.pipeline_mode<synchronous>, transform_indices = @transform_2, window_bounds = array<i64: 8, 1>}, {transform_indices = @transform_3, window_bounds = array<i64: 1, 8, 64>}]} {
    %c0 = arith.constant 0 : index
    %c0_0 = arith.constant 0 : index
    %c0_1 = arith.constant 0 : index
    %0 = vector.load %arg2[%c0, %c0_0, %c0_1] : memref<1x16x64xbf16, #tpu.memory_space<vmem>>, vector<1x16x64xbf16>
    %1 = vector.shape_cast %0 : vector<1x16x64xbf16> to vector<16x64xbf16>
    %2 = arith.extf %1 : vector<16x64xbf16> to vector<16x64xf32>
    %cst = arith.constant 0.000000e+00 : f32
    %3 = vector.broadcast %cst : f32 to vector<16x64xf32>
    %4 = arith.maximumf %2, %3 : vector<16x64xf32>
    %c0_2 = arith.constant 0 : index
    %c0_3 = arith.constant 0 : index
    %5 = vector.load %arg3[%c0_2, %c0_3] : memref<8x16xf32, #tpu.memory_space<vmem>>, vector<8x16xf32>
    %cst_4 = arith.constant dense<0.000000e+00> : vector<8x64xf32>
    %6 = tpu.matmul %5, %4, %cst_4 {dimension_numbers = #tpu.dot_dimension_numbers<[1], [0], [0], [1], [0, 0, 1, 1], [], []>} : vector<8x16xf32>, vector<16x64xf32>, vector<8x64xf32> -> vector<8x64xf32>
    %c0_5 = arith.constant 0 : index
    %c0_6 = arith.constant 0 : index
    %7 = vector.load %arg4[%c0_5, %c0_6] : memref<8x1xf32, #tpu.memory_space<vmem>>, vector<8x1xf32>
    %8 = vector.broadcast %7 : vector<8x1xf32> to vector<8x64xf32>
    %9 = arith.addf %6, %8 : vector<8x64xf32>
    %c0_7 = arith.constant 0 : index
    %c0_8 = arith.constant 0 : index
    %c0_9 = arith.constant 0 : index
    %10 = vector.load %arg5[%c0_7, %c0_8, %c0_9] : memref<1x8x64xf32, #tpu.memory_space<vmem>>, vector<1x8x64xf32>
    %11 = vector.shape_cast %10 : vector<1x8x64xf32> to vector<8x64xf32>
    %12 = vector.shape_cast %9 : vector<8x64xf32> to vector<1x8x64xf32>
    tpu.vector_store %arg5[%c0_7, %c0_8, %c0_9], %12 {strides = array<i32>} : memref<1x8x64xf32, #tpu.memory_space<vmem>>, vector<1x8x64xf32>,
    return
  }
  func.func @transform_0(%arg0: i32, %arg1: i32) -> (i32, i32, i32) {
    %c0_i32 = arith.constant 0 : i32
    %c0_i32_0 = arith.constant 0 : i32
    return %arg0, %c0_i32, %arg1 : i32, i32, i32
  }
  func.func @transform_1(%arg0: i32, %arg1: i32) -> (i32, i32) {
    %c0_i32 = arith.constant 0 : i32
    %c0_i32_0 = arith.constant 0 : i32
    %c0_i32_1 = arith.constant 0 : i32
    return %c0_i32, %c0_i32_0 : i32, i32
  }
  func.func @transform_2(%arg0: i32, %arg1: i32) -> (i32, i32) {
    %c0_i32 = arith.constant 0 : i32
    %c0_i32_0 = arith.constant 0 : i32
    %c0_i32_1 = arith.constant 0 : i32
    return %c0_i32, %c0_i32_0 : i32, i32
  }
  func.func @transform_3(%arg0: i32, %arg1: i32) -> (i32, i32, i32) {
    %c0_i32 = arith.constant 0 : i32
    %c0_i32_0 = arith.constant 0 : i32
    return %arg0, %c0_i32, %arg1 : i32, i32, i32
  }
}

</mosaic_0001>

<bundles_post_ra>
// kernel: factorized_reduce_pallas.1
= control target key start
LH: loop header
LB: loop body
LE: loop exit
PB: predicated region body
PF: predicated region fallthrough
CT: control target
= control target key end

     0   :  { %s472_s12 = smov 0   ;;  %s474_s13 = smov 0   ;;  %s511_s0 = inlined_call_operand.vmem [shape: bf16[2,16,64], index: 0, kind: input, shape index: {}]   ;;  %s512_s1 = inlined_call_operand.vmem [shape: f32[8,16], index: 1, kind: input, shape index: {}]   ;;  %s513_s2 = inlined_call_operand.vmem [shape: f32[8,1], index: 2, kind: input, shape index: {}]   ;;  %s514_s3 = inlined_call_operand.vmem [shape: f32[2,8,64], index: 3, kind: output, shape index: {}]  }
   0x1   :  { %s476_s14 = smov 0  }
   0x2 LB: > { %s25_s15 = sadd.s32 1, %s442_s13  ;;  %p370_p0 = scmp.ge.s32.totalorder %s446_s14, 1  ;;  %s446_s14 = sphi %s476_s14, %s13_s14   ;;  %s442_s13 = sphi %s474_s13, %s516_s13   ;;  %s438_s12 = sphi %s472_s12, %s515_s12  }
   0x3   : > { %p27_p1 = scmp.ge.s32.totalorder %s25_s15, 2  ;;  %p156_p2 = scmp.lt.s32.totalorder %s446_s14, 3 }
   0x5   : > { %s518_s15 = smov (%p27_p1, %s25_s15), 0  ;;  %p157_p3 = pnand %p370_p0, %p156_p2 }
   0x6   : > { %p185_p4 = scmp.lt.s32.totalorder (!%p157_p3), %s438_s12, 1  ;;  %v448_v0 = vmov (!%p157_p3), 0.0|0.0   ;;  %vm449_vm0 = vmmov (!%p157_p3), 0   ;;  %v450_v1 = vmov (!%p157_p3), 0.0   ;;  %v207_v2 = vld [vmem:[%s513_s2] sm:$0xff] (!%p157_p3)  ;;  %v451_v3 = vmov (!%p157_p3), 0  }
   0x7   : > { %160 = sbr.rel (%p157_p3) target bundleno = 242 (0xf2), region = 32  ;;  %392 = vmatprep.subr.bf16.mxu0 (!%p157_p3), %v448_v0  ;;  %389 = vmatprep.mubr.msk.f32.mxu0 (!%p157_p3), %vm449_vm0, %v450_v1  ;;  %v206_v10 = vld [vmem:[%s512_s1] sm:$0xff] (!%p157_p3)  ;;  %vm213_vm1 = vcmask (!%p157_p3), 130048   ;;  %vm287_vm2 = vcmask (!%p157_p3), 523264  }
   0x8   : > { %423 = vset.pattern.permute.xlu0 (!%p157_p3), %v451_v3 }
   0x9   : > { %210 = vperm.xlu0 (!%p157_p3), %423, %v207_v2  }
   0xe   : > { %s520_s12 = smov (!%p185_p4, %s438_s12), 1 }
   0xf   : > { %s377_s18 = sshll.u32 %s520_s12, 3 }
  0x10   : > { %s192_s21 = scalar_lea.vmem %s511_s0, %s377_s18  ;;  %s199_s26 = scalar_lea.vmem %s514_s3, %s377_s18 }
  0x11   : > { %v379_v4 = vld [vmem:[%s192_s21] sm:$0xff]  }
  0x12   : > { %v380_v5 = vunpack.c.l.bf16 %v379_v4  ;;  %v381_v6 = vunpack.c.h.bf16 %v379_v4 }
  0x14   : > { %v204_v7 = vmax.f32 %v380_v5, 0.0  ;;  %v205_v8 = vmax.f32 %v381_v6, 0.0 }
  0x16   : > { %v393_v9 = vpack.c.bf16 %v205_v8, %v204_v7 }
  0x18   : > { %394 = vmatpush3.bf16.msra.mxu0 %v393_v9 }
  0x1b   : > { %390 = vmatmul.mubr.msk.f32.vlgmr.msra.gmra.mrb[0].mxu0 %vm213_vm1, %v206_v10 }
  0x88   : > { %v211_v11 = vpop.permute.xlu0 %210 }
  0xee   : > { %v283_v12 = vpop.f32.mrb[0].mxu0 }
  0xef   : > { %v284_v13 = vadd.f32 %v283_v12, %v211_v11  ;;  %v391_v14 = vpop.f32.mrb[1].mxu0 }
  0xf1   : > { %288 = vst.msk [vmem:[%s199_s26] sm:$0xff] %vm287_vm2, %v284_v13 }
  0xf2 PF: > { %s13_s14 = sadd.s32 1, %s446_s14   ;;  %s515_s12 = smov %s442_s13 }
  0xf3   : > { %p10_p5 = scmp.ge.s32.totalorder %s13_s14, 4   ;;  %s516_s13 = smov %s518_s15 }
  0xf5   :  { %12 = sbr.rel (!%p10_p5) target bundleno = 2 (0x2), region = 62 }

</bundles_post_ra>
